<compile_context>
chip_gen: v5e
topology: v5e:2x2
jax: 0.10.0
libtpu: 0.0.40
codegen_flags: <defaults>
</compile_context>

<pallas_src>
import jax
import jax.numpy as jnp
from jax.experimental import pallas as pl
from jax.experimental.pallas import tpu as pltpu

_LANE = 128      # vreg lane width (last dim)
_SUBLANE = 8     # vreg sublane count (second-to-last dim)


# --------------------------------------------------------------------------
# Kernel 1: batch-invariant positional encoding (runs exactly once).
# --------------------------------------------------------------------------
def _pos_enc_kernel(pos_ref, mu_ref, inv2s_ref, hls_ref, emb_ref, pe_ref):
    a = pos_ref[...] - mu_ref[...]                       # (S, K)
    # log_p = -(pos - mu)^2 / (2*sigma) - log(sigma)/2, constants folded.
    log_p = -(a * a) * inv2s_ref[...] - hls_ref[...]     # (S, K)

    # Numerically stable softmax over K (dim=1).  Exact reciprocal: this
    # kernel runs once per forward, so precision here is free.
    m = jnp.max(log_p, axis=1, keepdims=True)
    e = jnp.exp(log_p - m)
    M = e * pl.reciprocal(jnp.sum(e, axis=1, keepdims=True), approx=False)

    # (S, K) @ (K, D) -> (S, D).  One-time tiny matmul, off the hot path.
    pe_ref[...] = jnp.dot(M, emb_ref[...], preferred_element_type=jnp.float32)


# --------------------------------------------------------------------------
# Kernel 2: lane-dense broadcast add over the batch (the hot, mem-bound path).
# --------------------------------------------------------------------------
def _add_pos_enc_kernel(pe_ref, x_ref, o_ref):
    # pe_ref: (1, tc) f32 column slice of the flattened pos_enc
    # x_ref : (bt, tc) slab of the flattened input
    o_ref[...] = (x_ref[...] + pe_ref[...]).astype(o_ref.dtype)


# --------------------------------------------------------------------------
# Tiling: (bt, tc) row/column tiles over the flattened (B, S*D) add.
# --------------------------------------------------------------------------
def _pick_tiles(B, SD, itemsize, block_budget_bytes):
    """Choose (bt, tc) with TPU layout-legal shapes.

    Invariants:
      * tc is a multiple of 128 lanes, or tc == SD (full extent).
      * bt is a multiple of 8 sublanes, or bt == B (full extent).
    Targets:
      * one (bt, tc) x/out block (and the f32 pe block) stays within budget,
      * >= 2 total grid steps whenever the problem allows it (v7x megacore).
    """
    col_itemsize = max(itemsize, 4)               # the pe block is always f32
    min_rows = B if B < _SUBLANE else _SUBLANE    # smallest row tile we accept

    # ---- column tile over the flattened S*D axis (lane dimension) ----
    if SD <= _LANE or SD * col_itemsize * min_rows <= block_budget_bytes:
        tc = SD
    else:
        max_cols = (block_budget_bytes // (col_itemsize * min_rows)) // _LANE * _LANE
        max_cols = max(_LANE, min(max_cols, (SD // _LANE) * _LANE))
        # Prefer a 128-multiple that divides SD exactly (every store is an
        # unmasked full-lane vst); otherwise accept one masked remainder block.
        tc = max_cols
        for cand in range(max_cols, _LANE - 1, -_LANE):
            if SD % cand == 0:
                tc = cand
                break

    # ---- row tile over the batch axis (sublane dimension) ----
    max_rows = max(min_rows, block_budget_bytes // max(1, tc * itemsize))
    if B <= max_rows:
        bt = B                                    # full extent: always legal
    else:
        bt = max(_SUBLANE, (max_rows // _SUBLANE) * _SUBLANE)
        bt = min(bt, B)

    # ---- guarantee >= 2 grid steps so both v7x TensorCores stream HBM ----
    def n_steps(bt_, tc_):
        return pl.cdiv(B, bt_) * pl.cdiv(SD, tc_)

    while n_steps(bt, tc) < 2:
        if tc >= 2 * _LANE and (tc // 2) % _LANE == 0:
            tc //= 2                              # split columns (lane-legal)
        elif bt >= 2 * _SUBLANE:
            bt = max(_SUBLANE, ((bt // 2) // _SUBLANE) * _SUBLANE)
        else:
            break                                 # genuinely tiny workload
    return bt, tc


# --------------------------------------------------------------------------
# Wrapper
# --------------------------------------------------------------------------
def gaussian_position(x, positions, mu, sigma, embedding,
                      block_budget_bytes=8 << 20):
    B, S, D = x.shape
    K = embedding.shape[0]
    assert positions.shape == (S, K)

    # Fold the per-element divide/log into constants (tiny (1, K) math).
    inv_two_sigma = 0.5 / sigma            # (1, K)
    half_log_sigma = 0.5 * jnp.log(sigma)  # (1, K)

    # ---- One-time pos_enc: (S, D), full arrays as single VMEM blocks. ----
    pos_enc = pl.pallas_call(
        _pos_enc_kernel,
        out_shape=jax.ShapeDtypeStruct((S, D), jnp.float32),
    )(positions, mu, inv_two_sigma, half_log_sigma, embedding)

    # ---- Per-batch broadcast add on the lane-dense flattened view. ----
    SD = S * D
    x2 = x.reshape(B, SD)                  # contiguous flatten (free)
    pe2 = pos_enc.reshape(1, SD)

    itemsize = jnp.dtype(x.dtype).itemsize
    bt, tc = _pick_tiles(B, SD, itemsize, block_budget_bytes)
    grid = (pl.cdiv(B, bt), pl.cdiv(SD, tc))

    # Scoped VMEM: 2 x-buffers + 2 out-buffers + 2 pe-buffers + slack,
    # clamped to fit every generation (v7x physical VMEM is only 64 MiB).
    need = 4 * bt * tc * itemsize + 2 * tc * 4 + (2 << 20)
    vmem_limit = int(min(max(need, 16 << 20), 56 << 20))

    out2 = pl.pallas_call(
        _add_pos_enc_kernel,
        out_shape=jax.ShapeDtypeStruct((B, SD), x.dtype),
        grid=grid,
        in_specs=[
            pl.BlockSpec((1, tc), lambda i, j: (0, j)),    # pos_enc slice
            pl.BlockSpec((bt, tc), lambda i, j: (i, j)),   # x slab
        ],
        out_specs=pl.BlockSpec((bt, tc), lambda i, j: (i, j)),
        input_output_aliases={1: 0},       # out aliases x2 (in-place if donated)
        compiler_params=pltpu.CompilerParams(
            dimension_semantics=("parallel", "parallel"),
            vmem_limit_bytes=vmem_limit,
        ),
    )(pe2, x2)

    return out2.reshape(B, S, D)


# --------------------------------------------------------------------------
# Parameter init mirroring the PyTorch __init__, and a pure-JAX reference.
# --------------------------------------------------------------------------
def make_params(key, d_model, total_size, K=10):
    limit = (6.0 / (K + d_model)) ** 0.5   # xavier_uniform on [K, d_model]
    embedding = jax.random.uniform(
        key, (K, d_model), dtype=jnp.float32, minval=-limit, maxval=limit
    )
    positions = jnp.tile(
        jnp.arange(total_size, dtype=jnp.float32)[:, None], (1, K)
    )
    interval = total_size / K
    mu = (jnp.arange(K, dtype=jnp.float32) * interval)[None, :]   # (1, K)
    sigma = jnp.ones((1, K), dtype=jnp.float32) * 50.0            # (1, K)
    return positions, mu, sigma, embedding


def reference(x, positions, mu, sigma, embedding):
    a = positions - mu
    log_p = -(a * a) / (2.0 * sigma) - jnp.log(sigma) / 2.0
    M = jax.nn.softmax(log_p, axis=1)
    pos_enc = M @ embedding
    return x + pos_enc[None, :, :]


if __name__ == "__main__":
    key = jax.random.PRNGKey(0)
    k_emb, k_x = jax.random.split(key)

    B, S, D, K = 2, 16, 32, 10   # total_size == seq_length == S

    positions, mu, sigma, embedding = make_params(k_emb, D, S, K)
    x = jax.random.normal(k_x, (B, S, D), dtype=jnp.float32)

    out = gaussian_position(x, positions, mu, sigma, embedding)
    out = jax.block_until_ready(out)

    ref = reference(x, positions, mu, sigma, embedding)
    assert out.shape == (B, S, D)
    assert jnp.allclose(out, ref, atol=1e-5, rtol=1e-5), "mismatch vs reference"

    print("KERNEL_OK")
</pallas_src>

<mosaic_0001>
module attributes {stable_mosaic.version = 11 : i64} {
  func.func @_pos_enc_kernel(%arg0: memref<16x10xf32, #tpu.memory_space<vmem>>, %arg1: memref<1x10xf32, #tpu.memory_space<vmem>>, %arg2: memref<1x10xf32, #tpu.memory_space<vmem>>, %arg3: memref<1x10xf32, #tpu.memory_space<vmem>>, %arg4: memref<10x32xf32, #tpu.memory_space<vmem>>, %arg5: memref<16x32xf32, #tpu.memory_space<vmem>>) attributes {dimension_semantics = [], scalar_prefetch = 0 : i64, scratch_operands = 0 : i64, tpu.core_type = #tpu.core_type<tc>} {
    %c0 = arith.constant 0 : index
    %c0_0 = arith.constant 0 : index
    %0 = vector.load %arg0[%c0, %c0_0] : memref<16x10xf32, #tpu.memory_space<vmem>>, vector<16x10xf32>
    %c0_1 = arith.constant 0 : index
    %c0_2 = arith.constant 0 : index
    %1 = vector.load %arg1[%c0_1, %c0_2] : memref<1x10xf32, #tpu.memory_space<vmem>>, vector<1x10xf32>
    %2 = vector.broadcast %1 : vector<1x10xf32> to vector<16x10xf32>
    %3 = arith.subf %0, %2 : vector<16x10xf32>
    %4 = arith.mulf %3, %3 : vector<16x10xf32>
    %cst = arith.constant 0.000000e+00 : f32
    %5 = vector.broadcast %cst : f32 to vector<16x10xf32>
    %6 = arith.subf %5, %4 : vector<16x10xf32>
    %c0_3 = arith.constant 0 : index
    %c0_4 = arith.constant 0 : index
    %7 = vector.load %arg2[%c0_3, %c0_4] : memref<1x10xf32, #tpu.memory_space<vmem>>, vector<1x10xf32>
    %8 = vector.broadcast %7 : vector<1x10xf32> to vector<16x10xf32>
    %9 = arith.mulf %6, %8 : vector<16x10xf32>
    %c0_5 = arith.constant 0 : index
    %c0_6 = arith.constant 0 : index
    %10 = vector.load %arg3[%c0_5, %c0_6] : memref<1x10xf32, #tpu.memory_space<vmem>>, vector<1x10xf32>
    %11 = vector.broadcast %10 : vector<1x10xf32> to vector<16x10xf32>
    %12 = arith.subf %9, %11 : vector<16x10xf32>
    %cst_7 = arith.constant dense<0xFF800000> : vector<16xf32>
    %13 = vector.multi_reduction <maximumf>, %12, %cst_7 [1] : vector<16x10xf32> to vector<16xf32>
    %14 = vector.shape_cast %13 : vector<16xf32> to vector<16x1xf32>
    %15 = vector.broadcast %14 : vector<16x1xf32> to vector<16x10xf32>
    %16 = arith.subf %12, %15 : vector<16x10xf32>
    %17 = math.exp %16 : vector<16x10xf32>
    %cst_8 = arith.constant dense<0.000000e+00> : vector<16xf32>
    %18 = vector.multi_reduction <add>, %17, %cst_8 [1] : vector<16x10xf32> to vector<16xf32>
    %19 = vector.shape_cast %18 : vector<16xf32> to vector<16x1xf32>
    %20 = tpu.reciprocal %19 : vector<16x1xf32> -> vector<16x1xf32>
    %21 = vector.broadcast %20 : vector<16x1xf32> to vector<16x10xf32>
    %22 = arith.mulf %17, %21 : vector<16x10xf32>
    %c0_9 = arith.constant 0 : index
    %c0_10 = arith.constant 0 : index
    %23 = vector.load %arg4[%c0_9, %c0_10] : memref<10x32xf32, #tpu.memory_space<vmem>>, vector<10x32xf32>
    %cst_11 = arith.constant dense<0.000000e+00> : vector<16x32xf32>
    %24 = tpu.matmul %22, %23, %cst_11 {dimension_numbers = #tpu.dot_dimension_numbers<[1], [0], [0], [1], [0, 0, 1, 1], [], []>} : vector<16x10xf32>, vector<10x32xf32>, vector<16x32xf32> -> vector<16x32xf32>
    %c0_12 = arith.constant 0 : index
    %c0_13 = arith.constant 0 : index
    %25 = vector.load %arg5[%c0_12, %c0_13] : memref<16x32xf32, #tpu.memory_space<vmem>>, vector<16x32xf32>
    tpu.vector_store %arg5[%c0_12, %c0_13], %24 {strides = array<i32>} : memref<16x32xf32, #tpu.memory_space<vmem>>, vector<16x32xf32>,
    return
  }
}

</mosaic_0001>

<bundles_post_ra>
// kernel: tpu_custom_call.1
= control target key start
LH: loop header
LB: loop body
LE: loop exit
PB: predicated region body
PF: predicated region fallthrough
CT: control target
= control target key end

     0   :  { %10 = vsyncpa [#allocation3], 0  ;;  %s390_s0 = inlined_call_operand.hbm [shape: f32[16,10], index: 0, kind: input, shape index: {}]   ;;  %s391_s1 = inlined_call_operand.hbm [shape: f32[1,10], index: 1, kind: input, shape index: {}]   ;;  %s392_s2 = inlined_call_operand.vmem [shape: f32[1,10], index: 2, kind: input, shape index: {}]   ;;  %s393_s3 = inlined_call_operand.vmem [shape: f32[1,10], index: 3, kind: input, shape index: {}]   ;;  %s394_s4 = inlined_call_operand.hbm [shape: f32[10,32], index: 4, kind: input, shape index: {}]   ;;  %s395_s5 = inlined_call_operand.hbm [shape: f32[16,32], index: 5, kind: output, shape index: {}]  }
   0x1   :  { %11 = vsyncpa [#allocation6], 0  ;;  %s31_s20 = sshll.u32 %s391_s1, 4  ;;  %s32_s20 = int_to_ptr.hbm [resolvable:$true] %s31_s20 }
   0x2   :  { %12 = vsyncpa [#allocation4], 0  ;;  %s321_s21 = smov [#allocation5]   ;;  %s17_s25 = sshll.u32 %s390_s0, 4  ;;  %s18_s25 = int_to_ptr.hbm [resolvable:$true] %s17_s25 }
   0x3   :  { %s33_s22 = sshll.u32 %s321_s21, 4  ;;  %s322_s26 = smov [#allocation2]   ;;  %s34_s22 = int_to_ptr.vmem [resolvable:$true] %s33_s22 }
   0x4   :  { %36 = dma.hbm_to_vmem [thread:$0]  %s32_s20, 16, %s34_s22, [#allocation6]  }
   0x5   :  { %s19_s27 = sshll.u32 %s322_s26, 4  ;;  %s323_s28 = smov 128   ;;  %s20_s27 = int_to_ptr.vmem [resolvable:$true] %s19_s27 }
   0x6   :  { %s324_s29 = smov 8   ;;  %s45_s6 = sshll.u32 %s394_s4, 4  ;;  %s46_s6 = int_to_ptr.hbm [resolvable:$true] %s45_s6 }
   0x7   :  { %25 = dma.hbm_to_vmem [thread:$0]  %s18_s25, 256, %s20_s27, [#allocation3], %s323_s28, %s323_s28, %s324_s29  }
   0x8   :  { %s325_s7 = smov [#allocation7]  }
   0x9   :  { %s47_s8 = sshll.u32 %s325_s7, 4  ;;  %s48_s8 = int_to_ptr.vmem [resolvable:$true] %s47_s8 }
   0xa   :  { %53 = dma.hbm_to_vmem [thread:$0]  %s46_s6, 256, %s48_s8, [#allocation6], %s323_s28, %s323_s28, %s324_s29  }
   0xb   :  { %315 = dma.done.wait [#allocation3], 256  }
   0xc   :  { %316 = vsyncadd [#allocation3], 4294967040 }
   0xd   :  { %317 = dma.done.wait [#allocation6], 272  }
   0xe   :  { %318 = vsyncadd [#allocation6], 4294967024  ;;  %v66_v0 = vld [vmem:[#allocation2] sm:$0xff]  ;;  %v208_v1 = vld [vmem:[#allocation5] ss:$0 sm:$0xff]  ;;  %vm90_vm0 = vcmask 80896  }
   0xf   :  { %v72_v2 = vsub.f32 %v66_v0, %v208_v1  ;;  %v67_v3 = vld [vmem:[#allocation2 + $0x8] sm:$0xff]  ;;  %v209_v6 = vld [vmem:[%s392_s2] ss:$0 sm:$0xff]  ;;  %v140_v27 = vld [vmem:[#allocation7 + $0x8] sm:$0x3]  ;;  %vm147_vm1 = vcmask 1041408  }
  0x10   :  { %v73_v4 = vsub.f32 %v67_v3, %v208_v1  ;;  %v210_v9 = vld [vmem:[%s393_s3] ss:$0 sm:$0xff]  ;;  %197 = vmatpush.msk.msra.mxu0 %vm147_vm1, %v140_v27  ;;  %200 = vmatpush.msk.msra.mxu1 %vm147_vm1, %v140_v27  ;;  %v139_v28 = vld [vmem:[#allocation7] sm:$0xff]  ;;  %vm174_vm10 = vcmask 261120   ;;  %s326_s2 = smov [#allocation8]   ;;  %s183_s13 = sshll.u32 %s395_s5, 4  ;;  %s184_s13 = int_to_ptr.hbm [resolvable:$true] %s183_s13 }
  0x11   :  { %v74_v5 = vmul.f32 %v72_v2, %v72_v2  ;;  %s181_s3 = sshll.u32 %s326_s2, 4  ;;  %s182_s3 = int_to_ptr.vmem [resolvable:$true] %s181_s3 }
  0x12   :  { %v75_v7 = vmul.f32 %v73_v4, %v73_v4  ;;  %166 = vmatpush.msra.mxu0 %v139_v28  ;;  %201 = vmatpush.msra.mxu1 %v139_v28 }
  0x13   :  { %v76_v8 = vsub.f32 0.0, %v74_v5 }
  0x14   :  { %v77_v10 = vsub.f32 0.0, %v75_v7 }
  0x15   :  { %v82_v11 = vmul.f32 %v209_v6, %v76_v8 }
  0x16   :  { %v83_v13 = vmul.f32 %v209_v6, %v77_v10 }
  0x17   :  { %v88_v12 = vsub.f32 %v82_v11, %v210_v9 }
  0x18   :  { %v89_v15 = vsub.f32 %v83_v13, %v210_v9 }
  0x19   :  { %v91_v14 = vsel %vm90_vm0, %v88_v12, -inf }
  0x1a   :  { %92 = vmax.xlane.f32.xlu0 %v91_v14  ;;  %v94_v16 = vsel %vm90_vm0, %v89_v15, -inf }
  0x22   :  { %95 = vmax.xlane.f32.xlu0 %v94_v16 }
  0x8d   :  { %v93_v17 = vpop.xlane.xlu0 %92 }
  0x8e   :  { %v97_v18 = vsub.f32 %v88_v12, %v93_v17 }
  0x90   :  { %v99_v19 = vmul.f32 1.442695, %v97_v18 }
  0x92   :  { %211 = vpow2.f32 %v99_v19 }
  0x95   :  { %v96_v20 = vpop.xlane.xlu0 %95 }
  0x96   :  { %v98_v21 = vsub.f32 %v89_v15, %v96_v20 }
  0x98   :  { %v212_v22 = vpop.eup %211  ;;  %v101_v23 = vmul.f32 1.442695, %v98_v21 }
  0x99   :  { %v103_v24 = vsel %vm90_vm0, %v212_v22, 0.0 }
  0x9a   :  { %213 = vpow2.f32 %v101_v23  ;;  %104 = vadd.xlane.f32.xlu1 %v103_v24 }
  0xa0   :  { %v214_v25 = vpop.eup %213 }
  0xa1   :  { %v106_v26 = vsel %vm90_vm0, %v214_v25, 0.0 }
  0xa2   :  { %107 = vadd.xlane.f32.xlu1 %v106_v26 }
 0x10d   :  { %v105_v29 = vpop.xlane.xlu1 %104 }
 0x10e   :  { %215 = vrcp.f32 %v105_v29  ;;  %v120_v34 = vand.u32 2147483648, %v105_v29  ;;  %v118_v36 = vand.u32 2147483647, %v105_v29  ;;  %vm114_vm3 = vweird.f32 %v105_v29 }
 0x110   :  { %v121_v39 = vor.u32 1.1754944e-38, %v120_v34  ;;  %vm119_vm5 = vcmp.eq.f32.partialorder %v118_v36, 8.507059e+37 }
 0x114   :  { %v216_v30 = vpop.eup %215 }
 0x115   :  { %v110_v31 = vmul.f32 %v216_v30, %v105_v29  ;;  %v108_v32 = vpop.xlane.xlu1 %107  ;;  %vm115_vm2 = vweird.f32 %v216_v30 }
 0x116   :  { %217 = vrcp.f32 %v108_v32  ;;  %vm116_vm4 = vmor %vm114_vm3, %vm115_vm2  ;;  %v134_v45 = vand.u32 2147483648, %v108_v32  ;;  %v132_v47 = vand.u32 2147483647, %v108_v32  ;;  %vm128_vm7 = vweird.f32 %v108_v32 }
 0x117   :  { %v111_v33 = vsub.f32 1.0, %v110_v31 }
 0x118   :  { %v135_v49 = vor.u32 1.1754944e-38, %v134_v45  ;;  %vm133_vm9 = vcmp.eq.f32.partialorder %v132_v47, 8.507059e+37 }
 0x119   :  { %v112_v35 = vmul.f32 %v216_v30, %v111_v33 }
 0x11b   :  { %v113_v37 = vadd.f32 %v216_v30, %v112_v35 }
 0x11c   :  { %v218_v38 = vpop.eup %217 }
 0x11d   :  { %v124_v40 = vmul.f32 %v218_v38, %v108_v32  ;;  %v117_v41 = vsel %vm116_vm4, %v216_v30, %v113_v37  ;;  %vm129_vm6 = vweird.f32 %v218_v38 }
 0x11e   :  { %v122_v42 = vsel %vm119_vm5, %v121_v39, %v117_v41  ;;  %vm130_vm8 = vmor %vm128_vm7, %vm129_vm6 }
 0x11f   :  { %v125_v43 = vsub.f32 1.0, %v124_v40  ;;  %v137_v44 = vmul.f32 %v212_v22, %v122_v42 }
 0x121   :  { %v126_v46 = vmul.f32 %v218_v38, %v125_v43  ;;  %198 = vmatmul.msk.f32.vlgmr.msra.gmra.mxu0 %vm90_vm0, %v137_v44 }
 0x123   :  { %v127_v48 = vadd.f32 %v218_v38, %v126_v46 }
 0x125   :  { %v131_v50 = vsel %vm130_vm8, %v218_v38, %v127_v48 }
 0x126   :  { %v136_v51 = vsel %vm133_vm9, %v135_v49, %v131_v50 }
 0x127   :  { %v138_v52 = vmul.f32 %v214_v25, %v136_v51 }
 0x129   :  { %199 = vmatmul.msk.f32.vlgmr.msra.gmra.mxu1 %vm90_vm0, %v138_v52 }
 0x19e   :  { %v168_v53 = vpop.f32.mrf.mxu0 }
 0x19f   :  { %175 = vst.msk [vmem:[#allocation8] sm:$0xff] %vm174_vm10, %v168_v53 }
 0x1a6   :  { %v171_v54 = vpop.f32.mrf.mxu1 }
 0x1a7   :  { %176 = vst.msk [vmem:[#allocation8 + $0x8] sm:$0xff] %vm174_vm10, %v171_v54 }
 0x1a8   :  { %189 = dma.vmem_to_hbm [thread:$0]  %s182_s3, 256, %s184_s13, [#allocation4], %s323_s28, %s323_s28, %s324_s29  }
 0x1a9   :  { %319 = dma.done.wait [#allocation4], 256  }
 0x1aa   :  { %320 = vsyncadd [#allocation4], 4294967040 }
 0x1ab   :  { %194 = vsyncpa [#allocation3], 1 }
 0x1ac   :  { %195 = vsyncpa [#allocation6], 1 }
 0x1ad   :  { %196 = vsyncpa [#allocation4], 1 }

</bundles_post_ra>
